<compile_context>
chip_gen: v7x
topology: tpu7x:2x2x1
jax: 0.10.0
libtpu: 0.0.40
codegen_flags: <defaults>
</compile_context>

<pallas_src>
import jax
import jax.numpy as jnp
from jax.experimental import pallas as pl
from jax.experimental.pallas import tpu as pltpu

C_IN, C_MID, C_OUT = 288, 96, 576
EPS = 1e-5


def _stats_kernel(x_ref, w1_ref, sum_ref, sq_ref):
    """Accumulate per-channel sum(y) and sum(y*y), y = W1 @ x, per image."""
    l = pl.program_id(1)

    @pl.when(l == 0)
    def _init():
        sum_ref[...] = jnp.zeros_like(sum_ref)
        sq_ref[...] = jnp.zeros_like(sq_ref)

    # (C_MID, C_IN) @ (C_IN, L) -> (C_MID, L); bf16 MXU inputs, f32 accumulate.
    y = jnp.dot(w1_ref[...], x_ref[...].astype(jnp.bfloat16),
                preferred_element_type=jnp.float32)
    sum_ref[...] += jnp.sum(y, axis=1, keepdims=True)        # (C_MID, 1)
    sq_ref[...] += jnp.sum(y * y, axis=1, keepdims=True)     # (C_MID, 1)


def _apply_kernel(x_ref, wf_ref, bf_ref, o_ref):
    """out = W_fused @ x + b_fused; stored in o_ref.dtype (bf16 by default)."""
    y = jnp.dot(wf_ref[...], x_ref[...].astype(jnp.bfloat16),
                preferred_element_type=jnp.float32)          # (C_OUT, L) f32
    o_ref[...] = (y + bf_ref[...]).astype(o_ref.dtype)


def _pick_l_tile(hw, max_l):
    """Lane tile: a multiple of 128 dividing hw, else the full hw dim."""
    if hw % 128 != 0:
        return hw            # full-dim lane block (exempt from 128 constraint)
    lt = min(hw, max_l)
    lt -= lt % 128
    lt = max(lt, 128)
    while hw % lt != 0:
        lt -= 128
    return lt


def conv_bn_conv(x_nchw, w1, gamma, beta, w2, *, max_l_tile=1024,
                 out_dtype=jnp.bfloat16):
    """x_nchw: (N, 288, H, W); w1: (96, 288, 1, 1); w2: (576, 96, 1, 1)."""
    N, C, H, W = x_nchw.shape
    assert C == C_IN
    HW = H * W
    M = N * HW

    # NCHW used directly: (N, C, H, W) -> (N, C, H*W) is a free reshape.
    x3d = x_nchw.reshape(N, C_IN, HW)

    l_tile = _pick_l_tile(HW, max_l_tile)
    n_l = HW // l_tile

    w1m = w1.reshape(C_MID, C_IN)
    w2m = w2.reshape(C_OUT, C_MID)
    w1_bf = w1m.astype(jnp.bfloat16)

    cparams_stats = pltpu.CompilerParams(
        dimension_semantics=("parallel", "arbitrary"),
        vmem_limit_bytes=32 * 1024 * 1024,
    )
    cparams_apply = pltpu.CompilerParams(
        dimension_semantics=("parallel", "parallel"),
        vmem_limit_bytes=32 * 1024 * 1024,
    )

    # ---- Pass 1: batch statistics of y = conv1(x) --------------------------
    sum_part, sq_part = pl.pallas_call(
        _stats_kernel,
        out_shape=(jax.ShapeDtypeStruct((N, C_MID, 1), jnp.float32),
                   jax.ShapeDtypeStruct((N, C_MID, 1), jnp.float32)),
        grid=(N, n_l),
        in_specs=[
            pl.BlockSpec((None, C_IN, l_tile), lambda n, l: (n, 0, l)),   # x
            pl.BlockSpec((C_MID, C_IN), lambda n, l: (0, 0)),             # W1
        ],
        out_specs=(
            pl.BlockSpec((None, C_MID, 1), lambda n, l: (n, 0, 0)),
            pl.BlockSpec((None, C_MID, 1), lambda n, l: (n, 0, 0)),
        ),
        compiler_params=cparams_stats,
    )(x3d, w1_bf)

    # ---- Tiny XLA glue: fold BN + conv2 into one weight/bias ---------------
    inv_m = 1.0 / float(M)
    sum_all = jnp.sum(sum_part, axis=(0, 2))                  # (C_MID,)
    sq_all = jnp.sum(sq_part, axis=(0, 2))                    # (C_MID,)
    mean = sum_all * inv_m
    var = jnp.maximum(sq_all * inv_m - mean * mean, 0.0)
    s = gamma.astype(jnp.float32) * jax.lax.rsqrt(var + EPS)  # (C_MID,)
    b = beta.astype(jnp.float32) - mean * s                   # (C_MID,)
    w2f = w2m.astype(jnp.float32)
    w_fused = (w2f @ (w1m.astype(jnp.float32) * s[:, None])).astype(jnp.bfloat16)
    b_fused = (w2f @ b)[:, None]                              # (C_OUT, 1) f32

    # ---- Pass 2: out = W_fused @ x + b_fused (fully parallel) --------------
    out3d = pl.pallas_call(
        _apply_kernel,
        out_shape=jax.ShapeDtypeStruct((N, C_OUT, HW), out_dtype),
        grid=(N, n_l),
        in_specs=[
            pl.BlockSpec((None, C_IN, l_tile), lambda n, l: (n, 0, l)),   # x
            pl.BlockSpec((C_OUT, C_IN), lambda n, l: (0, 0)),             # Wf
            pl.BlockSpec((C_OUT, 1), lambda n, l: (0, 0)),                # bf
        ],
        out_specs=pl.BlockSpec((None, C_OUT, l_tile), lambda n, l: (n, 0, l)),
        compiler_params=cparams_apply,
    )(x3d, w_fused, b_fused)

    return out3d.reshape(N, C_OUT, H, W)


def reference(x_nchw, w1, gamma, beta, w2):
    """Pure-JAX f32 reference of the PyTorch forward (training-mode BN)."""
    y = jnp.einsum('nchw,oc->nohw', x_nchw, w1.reshape(C_MID, C_IN))
    mean = jnp.mean(y, axis=(0, 2, 3), keepdims=True)
    var = jnp.mean((y - mean) ** 2, axis=(0, 2, 3), keepdims=True)
    yn = (y - mean) * jax.lax.rsqrt(var + EPS)
    yn = yn * gamma.reshape(1, C_MID, 1, 1) + beta.reshape(1, C_MID, 1, 1)
    return jnp.einsum('nchw,oc->nohw', yn, w2.reshape(C_OUT, C_MID))


if __name__ == "__main__":
    key = jax.random.PRNGKey(0)
    k_x, k_w1, k_g, k_b, k_w2 = jax.random.split(key, 5)

    # Channel counts fixed by the module; small spatial/batch for the demo.
    N, H, W = 2, 16, 16
    x = jax.random.normal(k_x, (N, C_IN, H, W), dtype=jnp.float32)
    w1 = jax.random.normal(k_w1, (C_MID, C_IN, 1, 1), dtype=jnp.float32) * 0.05
    gamma = 1.0 + 0.1 * jax.random.normal(k_g, (C_MID,), dtype=jnp.float32)
    beta = 0.1 * jax.random.normal(k_b, (C_MID,), dtype=jnp.float32)
    w2 = jax.random.normal(k_w2, (C_OUT, C_MID, 1, 1), dtype=jnp.float32) * 0.05

    # max_l_tile=128 -> two lane tiles per image (HW = 256): exercises the
    # multi-tile stats accumulation path.
    out = jax.block_until_ready(
        conv_bn_conv(x, w1, gamma, beta, w2, max_l_tile=128))
    ref = jax.block_until_ready(reference(x, w1, gamma, beta, w2))

    assert out.shape == (N, C_OUT, H, W)
    out_f32 = out.astype(jnp.float32)
    max_err = float(jnp.max(jnp.abs(out_f32 - ref)))
    rel_l2 = float(jnp.linalg.norm((out_f32 - ref).ravel())
                   / (float(jnp.linalg.norm(ref.ravel())) + 1e-8))
    # bf16 MXU inputs / bf16 output store (f32 accumulation + f32 BN math)
    # vs the all-f32 reference.
    assert max_err < 1e-1 and rel_l2 < 3e-2, (max_err, rel_l2)

    print("KERNEL_OK")
</pallas_src>

<mosaic_0001>
module attributes {stable_mosaic.version = 11 : i64} {
  func.func @_stats_kernel(%arg0: i32, %arg1: i32, %arg2: memref<1x288x128xf32, #tpu.memory_space<vmem>>, %arg3: memref<96x288xbf16, #tpu.memory_space<vmem>>, %arg4: memref<1x96x1xf32, #tpu.memory_space<vmem>>, %arg5: memref<1x96x1xf32, #tpu.memory_space<vmem>>) attributes {dimension_semantics = [#tpu.dimension_semantics<parallel>, #tpu.dimension_semantics<arbitrary>], iteration_bounds = array<i64: 2, 2>, scalar_prefetch = 0 : i64, scratch_operands = 0 : i64, tpu.core_type = #tpu.core_type<tc>, window_params = [{transform_indices = @transform_0, window_bounds = array<i64: 1, 288, 128>}, {pipeline_mode = #tpu.pipeline_mode<synchronous>, transform_indices = @transform_1, window_bounds = array<i64: 96, 288>}, {transform_indices = @transform_2, window_bounds = array<i64: 1, 96, 1>}, {transform_indices = @transform_3, window_bounds = array<i64: 1, 96, 1>}]} {
    %c0_i32 = arith.constant 0 : i32
    %0 = arith.cmpi eq, %arg1, %c0_i32 : i32
    %1 = arith.extui %0 : i1 to i32
    %c0_i32_0 = arith.constant 0 : i32
    %2 = arith.cmpi ne, %1, %c0_i32_0 : i32
    scf.if %2 {
      %cst_19 = arith.constant 0.000000e+00 : f32
      %25 = vector.broadcast %cst_19 : f32 to vector<96x1xf32>
      %c0_20 = arith.constant 0 : index
      %c0_21 = arith.constant 0 : index
      %c0_22 = arith.constant 0 : index
      %26 = vector.load %arg4[%c0_20, %c0_21, %c0_22] : memref<1x96x1xf32, #tpu.memory_space<vmem>>, vector<1x96x1xf32>
      %27 = vector.shape_cast %26 : vector<1x96x1xf32> to vector<96x1xf32>
      %28 = vector.shape_cast %25 : vector<96x1xf32> to vector<1x96x1xf32>
      tpu.vector_store %arg4[%c0_20, %c0_21, %c0_22], %28 {strides = array<i32>} : memref<1x96x1xf32, #tpu.memory_space<vmem>>, vector<1x96x1xf32>,
      %cst_23 = arith.constant 0.000000e+00 : f32
      %29 = vector.broadcast %cst_23 : f32 to vector<96x1xf32>
      %c0_24 = arith.constant 0 : index
      %c0_25 = arith.constant 0 : index
      %c0_26 = arith.constant 0 : index
      %30 = vector.load %arg5[%c0_24, %c0_25, %c0_26] : memref<1x96x1xf32, #tpu.memory_space<vmem>>, vector<1x96x1xf32>
      %31 = vector.shape_cast %30 : vector<1x96x1xf32> to vector<96x1xf32>
      %32 = vector.shape_cast %29 : vector<96x1xf32> to vector<1x96x1xf32>
      tpu.vector_store %arg5[%c0_24, %c0_25, %c0_26], %32 {strides = array<i32>} : memref<1x96x1xf32, #tpu.memory_space<vmem>>, vector<1x96x1xf32>,
    } else {
    }
    %c0 = arith.constant 0 : index
    %c0_1 = arith.constant 0 : index
    %3 = vector.load %arg3[%c0, %c0_1] : memref<96x288xbf16, #tpu.memory_space<vmem>>, vector<96x288xbf16>
    %c0_2 = arith.constant 0 : index
    %c0_3 = arith.constant 0 : index
    %c0_4 = arith.constant 0 : index
    %4 = vector.load %arg2[%c0_2, %c0_3, %c0_4] : memref<1x288x128xf32, #tpu.memory_space<vmem>>, vector<1x288x128xf32>
    %5 = vector.shape_cast %4 : vector<1x288x128xf32> to vector<288x128xf32>
    %6 = arith.truncf %5 : vector<288x128xf32> to vector<288x128xbf16>
    %cst = arith.constant dense<0.000000e+00> : vector<96x128xf32>
    %7 = tpu.matmul %3, %6, %cst {dimension_numbers = #tpu.dot_dimension_numbers<[1], [0], [0], [1], [0, 0, 1, 1], [], []>} : vector<96x288xbf16>, vector<288x128xbf16>, vector<96x128xf32> -> vector<96x128xf32>
    %c0_5 = arith.constant 0 : index
    %c0_6 = arith.constant 0 : index
    %c0_7 = arith.constant 0 : index
    %8 = vector.load %arg4[%c0_5, %c0_6, %c0_7] : memref<1x96x1xf32, #tpu.memory_space<vmem>>, vector<1x96x1xf32>
    %9 = vector.shape_cast %8 : vector<1x96x1xf32> to vector<96x1xf32>
    %cst_8 = arith.constant dense<0.000000e+00> : vector<96xf32>
    %10 = vector.multi_reduction <add>, %7, %cst_8 [1] : vector<96x128xf32> to vector<96xf32>
    %11 = vector.shape_cast %10 : vector<96xf32> to vector<96x1xf32>
    %12 = arith.addf %9, %11 : vector<96x1xf32>
    %c0_9 = arith.constant 0 : index
    %c0_10 = arith.constant 0 : index
    %c0_11 = arith.constant 0 : index
    %13 = vector.load %arg4[%c0_9, %c0_10, %c0_11] : memref<1x96x1xf32, #tpu.memory_space<vmem>>, vector<1x96x1xf32>
    %14 = vector.shape_cast %13 : vector<1x96x1xf32> to vector<96x1xf32>
    %15 = vector.shape_cast %12 : vector<96x1xf32> to vector<1x96x1xf32>
    tpu.vector_store %arg4[%c0_9, %c0_10, %c0_11], %15 {strides = array<i32>} : memref<1x96x1xf32, #tpu.memory_space<vmem>>, vector<1x96x1xf32>,
    %c0_12 = arith.constant 0 : index
    %c0_13 = arith.constant 0 : index
    %c0_14 = arith.constant 0 : index
    %16 = vector.load %arg5[%c0_12, %c0_13, %c0_14] : memref<1x96x1xf32, #tpu.memory_space<vmem>>, vector<1x96x1xf32>
    %17 = vector.shape_cast %16 : vector<1x96x1xf32> to vector<96x1xf32>
    %18 = arith.mulf %7, %7 : vector<96x128xf32>
    %cst_15 = arith.constant dense<0.000000e+00> : vector<96xf32>
    %19 = vector.multi_reduction <add>, %18, %cst_15 [1] : vector<96x128xf32> to vector<96xf32>
    %20 = vector.shape_cast %19 : vector<96xf32> to vector<96x1xf32>
    %21 = arith.addf %17, %20 : vector<96x1xf32>
    %c0_16 = arith.constant 0 : index
    %c0_17 = arith.constant 0 : index
    %c0_18 = arith.constant 0 : index
    %22 = vector.load %arg5[%c0_16, %c0_17, %c0_18] : memref<1x96x1xf32, #tpu.memory_space<vmem>>, vector<1x96x1xf32>
    %23 = vector.shape_cast %22 : vector<1x96x1xf32> to vector<96x1xf32>
    %24 = vector.shape_cast %21 : vector<96x1xf32> to vector<1x96x1xf32>
    tpu.vector_store %arg5[%c0_16, %c0_17, %c0_18], %24 {strides = array<i32>} : memref<1x96x1xf32, #tpu.memory_space<vmem>>, vector<1x96x1xf32>,
    return
  }
  func.func @transform_0(%arg0: i32, %arg1: i32) -> (i32, i32, i32) {
    %c0_i32 = arith.constant 0 : i32
    %c0_i32_0 = arith.constant 0 : i32
    return %arg0, %c0_i32, %arg1 : i32, i32, i32
  }
  func.func @transform_1(%arg0: i32, %arg1: i32) -> (i32, i32) {
    %c0_i32 = arith.constant 0 : i32
    %c0_i32_0 = arith.constant 0 : i32
    %c0_i32_1 = arith.constant 0 : i32
    return %c0_i32, %c0_i32_0 : i32, i32
  }
  func.func @transform_2(%arg0: i32, %arg1: i32) -> (i32, i32, i32) {
    %c0_i32 = arith.constant 0 : i32
    %c0_i32_0 = arith.constant 0 : i32
    %c0_i32_1 = arith.constant 0 : i32
    return %arg0, %c0_i32, %c0_i32_0 : i32, i32, i32
  }
  func.func @transform_3(%arg0: i32, %arg1: i32) -> (i32, i32, i32) {
    %c0_i32 = arith.constant 0 : i32
    %c0_i32_0 = arith.constant 0 : i32
    %c0_i32_1 = arith.constant 0 : i32
    return %arg0, %c0_i32, %c0_i32_0 : i32, i32, i32
  }
}

</mosaic_0001>

<bundles_post_ra>
// kernel: tpu_custom_call.1
= control target key start
LH: loop header
LB: loop body
LE: loop exit
PB: predicated region body
PF: predicated region fallthrough
CT: control target
= control target key end

     0   :  { %9 = vsyncpa [#allocation3], 0  ;;  %s1627_s0 = inlined_call_operand.hbm [shape: f32[2,288,256], index: 0, kind: input, shape index: {}]   ;;  %s1628_s1 = inlined_call_operand.hbm [shape: bf16[96,288], index: 1, kind: input, shape index: {}]   ;;  %s1629_s2 = inlined_call_operand.vmem [shape: f32[2,96,1], index: 2, kind: output, shape index: {0}]   ;;  %s1630_s3 = inlined_call_operand.vmem [shape: f32[2,96,1], index: 3, kind: output, shape index: {1}]  }
   0x1   :  { %11 = vsyncpa [#allocation3 + $0x1], 0 }
   0x2   :  { %12 = vsyncpa [#allocation5], 0  ;;  %s1272_s12 = smov 0   ;;  %s1274_s13 = smov 0  }
   0x3   :  { %s1276_s14 = smov 0   ;;  %s1278_s15 = smov 0  }
   0x4   :  { %s1280_s16 = smov 0   ;;  %s1282_s17 = smov 0  }
   0x5   :  { %s1284_s18 = smov 0   ;;  %s1286_s19 = smov 0  }
   0x6 LB: > { %s869_s20 = sadd.s32 4294967295, %s1242_s19   ;;  %s39_s21 = sadd.s32 1, %s1222_s14  ;;  %s1242_s19 = sphi %s1286_s19, %s18_s19   ;;  %s1238_s18 = sphi %s1284_s18, %s1651_s18   ;;  %s1234_s17 = sphi %s1282_s17, %s1650_s17   ;;  %s1230_s16 = sphi %s1280_s16, %s1649_s16   ;;  %s1226_s15 = sphi %s1278_s15, %s1648_s15   ;;  %s1222_s14 = sphi %s1276_s14, %s1647_s14   ;;  %s1218_s13 = sphi %s1274_s13, %s1646_s13   ;;  %s1214_s12 = sphi %s1272_s12, %s1645_s12  }
   0x7   : > { %p46_p0 = scmp.ne.s32.totalorder %s1222_s14, %s1218_s13  ;;  %p47_p1 = scmp.eq.s32.totalorder %s1242_s19, 0 }
   0x8   : > { %p52_p2 = scmp.ne.s32.totalorder %s1218_s13, %s1214_s12  ;;  %p1316_p3 = scmp.eq.s32.totalorder %s869_s20, 0 }
   0x9   : > { %p48_p4 = por %p47_p1, %p46_p0  ;;  %p871_p5 = scmp.ge.s32.totalorder %s1242_s19, 1 }
   0xa   : > { %s1636_s22 = scalar_select %p1316_p3, 1, 0 }
   0xb   : > { %p1323_p6 = por %p1316_p3, %p52_p2  ;;  %p136_p7 = scmp.lt.s32.totalorder %s1242_s19, 5 }
   0xc   : > { %s1244_s25 = smov [#allocation4]   ;;  %p1017_p10 = scmp.lt.s32.totalorder %s1242_s19, 4 }
   0xd   : > { %s1637_s23 = scalar_select %p1323_p6, 1, 0 }
   0xe   : > { %p1328_p8 = pnand %p871_p5, %p136_p7  ;;  %s148_s26 = sshll.u32 %s1244_s25, 4  ;;  %s149_s26 = int_to_ptr.vmem [resolvable:$true] %s148_s26 }
   0xf   : > { %p1341_p12 = pnand %p1017_p10, %p48_p4  ;;  %s1114_s4 = scalar_lea.hbm %s1628_s1, 2304 }
  0x10   : > { %s1638_s24 = scalar_select %p1328_p8, 1, 0 }
  0x11   : > { %p1008_p9 = pneg %p1328_p8  ;;  %p1115_p13 = scmp.ne.s32.totalorder %s1628_s1, %s1114_s4 }
  0x12   : > { %s1640_s28 = scalar_select %p1341_p12, 1, 0 }
  0x13   : > { %p1337_p11 = pnand %p1008_p9, %p1316_p3  ;;  %p1121_p5 = scmp.lt.u32.totalorder %s1114_s4, %s1628_s1 }
  0x15   : > { %p1116_p0 = pneg %p1337_p11 }
  0x17   : > { %p1117_p1 = pnand %p1116_p0, %p1115_p13 }
  0x19   : > { %p1118_p2 = pneg %p1117_p1 }
  0x1b   : > { %p1123_p4 = pnand %p1121_p5, %p1118_p2 }
  0x1d   : > { %1126 = shalt.err (!%p1123_p4)
}
  0x1e   : > { %s1127_s9 = scalar_lea.vmem %s149_s26, 2304  ;;  %p1135_p3 = scmp.lt.s32.totalorder %s149_s26, %s149_s26 }
  0x1f   : > { %p1128_p7 = scmp.ne.s32.totalorder %s149_s26, %s1127_s9  ;;  %p1136_p6 = scmp.lt.s32.totalorder %s1127_s9, %s1127_s9 }
  0x21   : > { %p1130_p9 = pnand %p1128_p7, %p1116_p0  ;;  %p1137_p8 = por %p1136_p6, %p1135_p3 }
  0x23   : > { %p1131_p10 = pneg %p1130_p9 }
  0x25   : > { %p1138_p12 = pnand %p1137_p8, %p1131_p10 }
  0x27   : > { %1141 = shalt.err (!%p1138_p12)
}
  0x28   : > { %s1245_s10 = smov 192   ;;  %s1246_s11 = smov 12  }
  0x29   : > { %1011 = dma.hbm_to_vmem [thread:$0]  (!%p1337_p11), %s1628_s1, 2304, %s149_s26, [#allocation5], %s1245_s10, %s1245_s10, %s1246_s11  }
  0x2a   : > { %s27_s25 = sadd.s32 1, %s1234_s17  ;;  %s30_s29 = sadd.s32 1, %s1238_s18 }
  0x2b   : > { %p28_p3 = scmp.ge.s32.totalorder %s27_s25, 2  ;;  %s162_s30 = sand.u32 1, %s1222_s14  }
  0x2c   : > { %s998_s4 = smul.u32 288, %s162_s30  ;;  %p1641_p12 = scmp.ne.s32.totalorder %s1640_s28, 0 }
  0x2d   : > { %s1653_s25 = smov (%p28_p3, %s27_s25), 0  ;;  %s1655_s29 = smov (!%p28_p3, %s30_s29), %s1238_s18 }
  0x2e   : > { %s35_s5 = ssub.s32 %s1234_s17, %s1653_s25  ;;  %p32_p6 = scmp.ge.s32.totalorder %s1655_s29, 2 }
  0x2f   : > { %s999_s27 = smul.u32 72, %s1238_s18  ;;  %s166_s6 = scalar_lea.vmem [#allocation2], %s998_s4 }
  0x30   : > { %s174_s7 = sshll.u32 %s166_s6, 4  ;;  %s1657_s29 = smov (%p32_p6, %s1655_s29), 0  ;;  %s1373_s7 = int_to_ptr.vmem [resolvable:$true] %s174_s7 }
  0x31   : > { %s171_s26 = sadd.s32 %s1234_s17, %s999_s27  ;;  %s34_s8 = ssub.s32 %s1238_s18, %s1657_s29 }
  0x32   : > { %s874_s9 = sshll.u32 %s171_s26, 7  ;;  %s36_s10 = sor.u32 %s35_s5, %s34_s8 }
  0x33   : > { %s1380_s20 = scalar_lea.hbm %s1627_s0, %s874_s9  ;;  %p37_p8 = scmp.eq.s32.totalorder %s36_s10, 0 }
  0x34   : > { %s1387_s6 = scalar_lea.sflag [#allocation3], %s162_s30  ;;  %s1142_s27 = scalar_lea.hbm %s1380_s20, 4608 }
  0x35   : > { %s1385_s4 = scalar_select %p37_p8, %s1222_s14, %s39_s21  }
  0x36   : > { %p1143_p11 = scmp.ne.s32.totalorder %s1380_s20, %s1142_s27  ;;  %p1144_p13 = pneg %p1641_p12 }
  0x37   : > { %s1147_s8 = scalar_lea.hbm %s1627_s0, 18432  ;;  %p1148_p2 = scmp.lt.u32.totalorder %s1380_s20, %s1627_s0 }
  0x38   : > { %p1145_p0 = pnand %p1144_p13, %p1143_p11  ;;  %p1149_p5 = scmp.lt.u32.totalorder %s1147_s8, %s1142_s27 }
  0x39   : > { %p1151_p7 = scmp.lt.u32.totalorder %s1142_s27, %s1380_s20 }
  0x3a   : > { %p1146_p1 = pneg %p1145_p0  ;;  %p1150_p4 = por %p1149_p5, %p1148_p2 }
  0x3c   : > { %p1152_p9 = por %p1151_p7, %p1150_p4 }
  0x3e   : > { %p1153_p10 = pnand %p1152_p9, %p1146_p1 }
  0x40   : > { %1156 = shalt.err (!%p1153_p10)
}
  0x41   : > { %s1157_s21 = scalar_lea.vmem %s1373_s7, 4608  ;;  %s1247_s30 = smov [#allocation2]  }
  0x42   : > { %p1158_p3 = scmp.ne.s32.totalorder %s1373_s7, %s1157_s21  ;;  %s1162_s10 = sshll.u32 %s1247_s30, 4  ;;  %s1163_s10 = int_to_ptr.vmem [resolvable:$false] %s1162_s10 }
  0x43   : > { %s1164_s12 = scalar_lea.vmem %s1163_s10, 9216  ;;  %p1165_p11 = scmp.lt.s32.totalorder %s1373_s7, %s1163_s10 }
  0x44   : > { %p1160_p6 = pnand %p1158_p3, %p1144_p13  ;;  %p1166_p0 = scmp.lt.s32.totalorder %s1164_s12, %s1157_s21 }
  0x46   : > { %p1161_p8 = pneg %p1160_p6  ;;  %p1167_p2 = por %p1166_p0, %p1165_p11 }
  0x48   : > { %p1168_p5 = pnand %p1167_p2, %p1161_p8 }
  0x4a   : > { %1171 = shalt.err (!%p1168_p5)
}
  0x4b   : > { %s1248_s27 = smov 256   ;;  %s1249_s5 = smov 128  }
  0x4c   : > { %s1250_s26 = smov 8   ;;  %p1642_p13 = scmp.ne.s32.totalorder %s1638_s24, 0 }
  0x4d   : > { %1015 = dma.hbm_to_vmem [thread:$0]  (!%p1641_p12), %s1380_s20, 4608, %s1373_s7, %s1387_s6, %s1248_s27, %s1249_s5, %s1250_s26  }
  0x4e   : > { %186 = sbr.rel (%p1642_p13) target bundleno = 556 (0x22c), region = 28  ;;  %s188_s8 = sand.u32 (!%p1642_p13), 1, %s1218_s13  }
  0x4f   : > { %s1000_s9 = smul.u32 (!%p1642_p13), 288, %s188_s8  ;;  %s189_s11 = scalar_lea.sflag (!%p1642_p13), [#allocation3], %s188_s8 }
  0x50   : > { %p1643_p1 = scmp.ne.s32.totalorder (!%p1642_p13), %s1637_s23, 0 }
  0x51   : > { %s1418_s21 = scalar_lea.vmem (!%p1642_p13), [#allocation2], %s1000_s9 }
  0x55   : > { %1205 = dma.done.wait (%p1643_p1), %s189_s11, 4608  }
  0x56   : > { %1207 = vsyncadd (%p1643_p1), %s189_s11, 4294962688  ;;  %p1644_p4 = scmp.ne.s32.totalorder %s1636_s22, 0 }
  0x58   : > { %1209 = dma.done.wait (%p1644_p4), [#allocation5], 2304  }
  0x59   : > { %1211 = vsyncadd (%p1644_p4), [#allocation5], 4294964992  ;;  %p224_p12 = scmp.lt.s32.totalorder %s1230_s16, 1  ;;  %p879_p7 = scmp.ne.s32.totalorder %s1226_s15, 0 }
  0x5a   : > { %vm239_vm0 = vcmask (!%p879_p7), 7168   ;;  %v1251_v0 = vmov (!%p879_p7), 0.0  }
  0x5b   : > { %s1659_s16 = smov (!%p224_p12, %s1230_s16), 1  ;;  %238 = sbr.rel (%p879_p7) target bundleno = 107 (0x6b), region = 40 }
  0x5c   : > { %s1001_s24 = smul.u32 96, %s1659_s16 }
  0x5e   : > { %s1433_s20 = scalar_lea.vmem %s1629_s2, %s1001_s24  ;;  %s1438_s23 = scalar_lea.vmem %s1630_s3, %s1001_s24 }
  0x5f   : > { %240 = vst.msk [vmem:[%s1433_s20] sm:$0xff] (!%p879_p7), %vm239_vm0, %v1251_v0  ;;  %241 = vst.msk [vmem:[%s1433_s20 + $0x8] sm:$0xff] (!%p879_p7), %vm239_vm0, %v1251_v0 }
  0x60   : > { %242 = vst.msk [vmem:[%s1433_s20 + $0x10] sm:$0xff] (!%p879_p7), %vm239_vm0, %v1251_v0  ;;  %243 = vst.msk [vmem:[%s1433_s20 + $0x18] sm:$0xff] (!%p879_p7), %vm239_vm0, %v1251_v0 }
  0x61   : > { %244 = vst.msk [vmem:[%s1433_s20 + $0x20] sm:$0xff] (!%p879_p7), %vm239_vm0, %v1251_v0  ;;  %245 = vst.msk [vmem:[%s1433_s20 + $0x28] sm:$0xff] (!%p879_p7), %vm239_vm0, %v1251_v0 }
  0x62   : > { %246 = vst.msk [vmem:[%s1433_s20 + $0x30] sm:$0xff] %vm239_vm0, %v1251_v0  ;;  %247 = vst.msk [vmem:[%s1433_s20 + $0x38] sm:$0xff] %vm239_vm0, %v1251_v0 }
  0x63   : > { %248 = vst.msk [vmem:[%s1433_s20 + $0x40] sm:$0xff] %vm239_vm0, %v1251_v0  ;;  %249 = vst.msk [vmem:[%s1433_s20 + $0x48] sm:$0xff] %vm239_vm0, %v1251_v0 }
  0x64   : > { %250 = vst.msk [vmem:[%s1433_s20 + $0x50] sm:$0xff] %vm239_vm0, %v1251_v0  ;;  %251 = vst.msk [vmem:[%s1433_s20 + $0x58] sm:$0xff] %vm239_vm0, %v1251_v0 }
  0x65   : > { %252 = vst.msk [vmem:[%s1438_s23] sm:$0xff] %vm239_vm0, %v1251_v0  ;;  %253 = vst.msk [vmem:[%s1438_s23 + $0x8] sm:$0xff] %vm239_vm0, %v1251_v0 }
  0x66   : > { %254 = vst.msk [vmem:[%s1438_s23 + $0x10] sm:$0xff] %vm239_vm0, %v1251_v0  ;;  %255 = vst.msk [vmem:[%s1438_s23 + $0x18] sm:$0xff] %vm239_vm0, %v1251_v0 }
  0x67   : > { %256 = vst.msk [vmem:[%s1438_s23 + $0x20] sm:$0xff] %vm239_vm0, %v1251_v0  ;;  %257 = vst.msk [vmem:[%s1438_s23 + $0x28] sm:$0xff] %vm239_vm0, %v1251_v0 }
  0x68   : > { %258 = vst.msk [vmem:[%s1438_s23 + $0x30] sm:$0xff] %vm239_vm0, %v1251_v0  ;;  %259 = vst.msk [vmem:[%s1438_s23 + $0x38] sm:$0xff] %vm239_vm0, %v1251_v0 }
  0x69   : > { %260 = vst.msk [vmem:[%s1438_s23 + $0x40] sm:$0xff] %vm239_vm0, %v1251_v0  ;;  %261 = vst.msk [vmem:[%s1438_s23 + $0x48] sm:$0xff] %vm239_vm0, %v1251_v0 }
  0x6a   : > { %262 = vst.msk [vmem:[%s1438_s23 + $0x50] sm:$0xff] %vm239_vm0, %v1251_v0  ;;  %263 = vst.msk [vmem:[%s1438_s23 + $0x58] sm:$0xff] %vm239_vm0, %v1251_v0 }
  0x6b PF: > { %v304_v1 = vld [vmem:[%s1418_s21 + $0x80] sm:$0xff]  ;;  %v305_v2 = vld [vmem:[%s1418_s21 + $0x88] sm:$0xff]  ;;  %v306_v6 = vld [vmem:[%s1418_s21 + $0x90] sm:$0xff]  ;;  %vm432_vm1 = vcmask 261120   ;;  %vm661_vm2 = vcmask 7168  }
  0x6c   : > { %v288_v3 = vld [vmem:[%s1418_s21] sm:$0xff]  ;;  %v332_v4 = vpack.c.bf16 %v305_v2, %v304_v1  ;;  %v289_v5 = vld [vmem:[%s1418_s21 + $0x8] sm:$0xff]  ;;  %v307_v7 = vld [vmem:[%s1418_s21 + $0x98] sm:$0xff] }
  0x6d   : > { %v324_v8 = vpack.c.bf16 %v289_v5, %v288_v3  ;;  %v333_v9 = vpack.c.bf16 %v307_v7, %v306_v6  ;;  %v290_v10 = vld [vmem:[%s1418_s21 + $0x10] sm:$0xff]  ;;  %v291_v11 = vld [vmem:[%s1418_s21 + $0x18] sm:$0xff]  ;;  %v308_v12 = vld [vmem:[%s1418_s21 + $0xa0] sm:$0xff] }
  0x6e   : > { %906 = vmatprep.subr.bf16.mxu0 %v332_v4  ;;  %982 = vmatprep.subr.bf16.mxu1 %v332_v4  ;;  %v309_v13 = vld [vmem:[%s1418_s21 + $0xa8] sm:$0xff]  ;;  %v325_v14 = vpack.c.bf16 %v291_v11, %v290_v10  ;;  %v292_v16 = vld [vmem:[%s1418_s21 + $0x20] sm:$0xff]  ;;  %v310_v18 = vld [vmem:[%s1418_s21 + $0xb0] sm:$0xff] }
  0x6f   : > { %907 = vmatpush3.bf16.msra.mxu0 %v324_v8  ;;  %990 = vmatpush3.bf16.msra.mxu1 %v324_v8  ;;  %v334_v15 = vpack.c.bf16 %v309_v13, %v308_v12  ;;  %v293_v17 = vld [vmem:[%s1418_s21 + $0x28] sm:$0xff]  ;;  %v311_v19 = vld [vmem:[%s1418_s21 + $0xb8] sm:$0xff]  ;;  %v294_v22 = vld [vmem:[%s1418_s21 + $0x30] sm:$0xff] }
  0x70   : > { %908 = vmatprep.subr.bf16.mxu0 %v333_v9  ;;  %983 = vmatprep.subr.bf16.mxu1 %v333_v9  ;;  %v326_v20 = vpack.c.bf16 %v293_v17, %v292_v16  ;;  %v335_v21 = vpack.c.bf16 %v311_v19, %v310_v18  ;;  %v295_v23 = vld [vmem:[%s1418_s21 + $0x38] sm:$0xff]  ;;  %v312_v24 = vld [vmem:[%s1418_s21 + $0xc0] sm:$0xff]  ;;  %v313_v25 = vld [vmem:[%s1418_s21 + $0xc8] sm:$0xff] }
  0x71   : > { %v1092_v26 = vld [vmem:[#allocation4 + $0x4] ss:$12 sps:$4 sm:$0xff]   ;;  %v327_v27 = vpack.c.bf16 %v295_v23, %v294_v22  ;;  %v336_v28 = vpack.c.bf16 %v313_v25, %v312_v24  ;;  %v297_v30 = vld [vmem:[%s1418_s21 + $0x48] sm:$0xff]  ;;  %v315_v33 = vld [vmem:[%s1418_s21 + $0xd8] sm:$0xff] }
  0x72   : > { %v296_v29 = vld [vmem:[%s1418_s21 + $0x40] sm:$0xff]  ;;  %v1095_v31 = vld [vmem:[#allocation4 + $0x7c] ss:$12 sps:$4 sm:$0xff]   ;;  %v314_v32 = vld [vmem:[%s1418_s21 + $0xd0] sm:$0xff]  ;;  %483 = vmatprep.mubr.bf16.mxu0 %v1092_v26 }
  0x73   : > { %909 = vmatpush3.bf16.msra.mxu0 %v325_v14  ;;  %991 = vmatpush3.bf16.msra.mxu1 %v325_v14  ;;  %v328_v34 = vpack.c.bf16 %v297_v30, %v296_v29  ;;  %v298_v35 = vld [vmem:[%s1418_s21 + $0x50] sm:$0xff]  ;;  %v299_v36 = vld [vmem:[%s1418_s21 + $0x58] sm:$0xff]  ;;  %v337_v37 = vpack.c.bf16 %v315_v33, %v314_v32  ;;  %v316_v38 = vld [vmem:[%s1418_s21 + $0xe0] sm:$0xff] }
  0x74   : > { %910 = vmatprep.subr.bf16.mxu0 %v334_v15  ;;  %984 = vmatprep.subr.bf16.mxu1 %v334_v15  ;;  %v317_v39 = vld [vmem:[%s1418_s21 + $0xe8] sm:$0xff]  ;;  %v300_v40 = vld [vmem:[%s1418_s21 + $0x60] sm:$0xff]  ;;  %v329_v41 = vpack.c.bf16 %v299_v36, %v298_v35  ;;  %v318_v44 = vld [vmem:[%s1418_s21 + $0xf0] sm:$0xff] }
  0x75   : > { %523 = vmatprep.mubr.bf16.mxu1 %v1095_v31  ;;  %v301_v42 = vld [vmem:[%s1418_s21 + $0x68] sm:$0xff]  ;;  %v338_v43 = vpack.c.bf16 %v317_v39, %v316_v38  ;;  %v319_v45 = vld [vmem:[%s1418_s21 + $0xf8] sm:$0xff]  ;;  %v302_v48 = vld [vmem:[%s1418_s21 + $0x70] sm:$0xff] }
  0x76   : > { %v330_v46 = vpack.c.bf16 %v301_v42, %v300_v40  ;;  %v339_v47 = vpack.c.bf16 %v319_v45, %v318_v44  ;;  %v303_v49 = vld [vmem:[%s1418_s21 + $0x78] sm:$0xff]  ;;  %v320_v50 = vld [vmem:[%s1418_s21 + $0x100] sm:$0xff]  ;;  %v321_v51 = vld [vmem:[%s1418_s21 + $0x108] sm:$0xff] }
  0x77   : > { %911 = vmatpush3.bf16.msra.mxu0 %v326_v20  ;;  %992 = vmatpush3.bf16.msra.mxu1 %v326_v20  ;;  %v331_v52 = vpack.c.bf16 %v303_v49, %v302_v48  ;;  %v340_v53 = vpack.c.bf16 %v321_v51, %v320_v50  ;;  %v322_v54 = vld [vmem:[%s1418_s21 + $0x110] sm:$0xff]  ;;  %v323_v55 = vld [vmem:[%s1418_s21 + $0x118] sm:$0xff]  ;;  %v1090_v56 = vld [vmem:[#allocation4] ss:$12 sps:$4 sm:$0xff]  }
  0x78   : > { %912 = vmatprep.subr.bf16.mxu0 %v335_v21  ;;  %985 = vmatprep.subr.bf16.mxu1 %v335_v21  ;;  %v1093_v57 = vld [vmem:[#allocation4 + $0x78] ss:$12 sps:$4 sm:$0xff]   ;;  %v1096_v58 = vld [vmem:[#allocation4 + $0x1c] ss:$12 sps:$4 sm:$0xff]   ;;  %v341_v59 = vpack.c.bf16 %v323_v55, %v322_v54  ;;  %v1100_v62 = vld [vmem:[#allocation4 + $0x20] ss:$12 sps:$4 sm:$0xff]  }
  0x79   : > { %v1098_v60 = vld [vmem:[#allocation4 + $0x8] ss:$12 sps:$4 sm:$0xff]   ;;  %v1099_v61 = vld [vmem:[#allocation4 + $0x18] ss:$12 sps:$4 sm:$0xff]   ;;  %v1104_v1 = vld [vmem:[#allocation4 + $0x30] ss:$12 sps:$4 sm:$0xff]  }
  0x7a   : > { %v1101_v63 = vld [vmem:[#allocation4 + $0x34] ss:$12 sps:$4 sm:$0xff]   ;;  %v1103_v0 = vld [vmem:[#allocation4 + $0x38] ss:$12 sps:$4 sm:$0xff]   ;;  %v1105_v2 = vld [vmem:[#allocation4 + $0x50] ss:$12 sps:$4 sm:$0xff]  }
  0x7b   : > { %913 = vmatpush3.bf16.msra.mxu0 %v327_v27  ;;  %993 = vmatpush3.bf16.msra.mxu1 %v327_v27  ;;  %v1106_v3 = vld [vmem:[#allocation4 + $0x4c] ss:$12 sps:$4 sm:$0xff]   ;;  %v1108_v4 = vld [vmem:[#allocation4 + $0x68] ss:$12 sps:$4 sm:$0xff]   ;;  %v1111_v7 = vld [vmem:[#allocation4 + $0x64] ss:$12 sps:$4 sm:$0xff]  }
  0x7c   : > { %914 = vmatprep.subr.bf16.mxu0 %v336_v28  ;;  %986 = vmatprep.subr.bf16.mxu1 %v336_v28  ;;  %v1109_v5 = vld [vmem:[#allocation4 + $0x48] ss:$12 sps:$4 sm:$0xff]   ;;  %v1110_v6 = vld [vmem:[#allocation4 + $0x80] ss:$12 sps:$4 sm:$0xff]  }
  0x7d   : > { %v1113_v8 = vld [vmem:[#allocation4 + $0x60] ss:$12 sps:$4 sm:$0xff]  }
  0x7f   : > { %915 = vmatpush3.bf16.msra.mxu0 %v328_v34  ;;  %994 = vmatpush3.bf16.msra.mxu1 %v328_v34 }
  0x80   : > { %916 = vmatprep.subr.bf16.mxu0 %v337_v37  ;;  %987 = vmatprep.subr.bf16.mxu1 %v337_v37 }
  0x83   : > { %917 = vmatpush3.bf16.msra.mxu0 %v329_v41  ;;  %995 = vmatpush3.bf16.msra.mxu1 %v329_v41 }
  0x84   : > { %918 = vmatprep.subr.bf16.mxu0 %v338_v43  ;;  %988 = vmatprep.subr.bf16.mxu1 %v338_v43 }
  0x87   : > { %919 = vmatpush3.bf16.msra.mxu0 %v330_v46  ;;  %996 = vmatpush3.bf16.msra.mxu1 %v330_v46 }
  0x88   : > { %920 = vmatprep.subr.bf16.mxu0 %v339_v47  ;;  %989 = vmatprep.subr.bf16.mxu1 %v339_v47 }
  0x8b   : > { %921 = vmatpush3.bf16.msra.mxu0 %v331_v52  ;;  %997 = vmatpush3.bf16.msra.mxu1 %v331_v52 }
  0x8c   : > { %966 = vmatprep.subr.bf16.mxu1 %v340_v53 }
  0x8e   : > { %484 = vmatmul.mubr.bf16.vlgmr.msra.gmra.mrb[0].mxu0 %v1090_v56  ;;  %524 = vmatmul.mubr.bf16.vlgmr.msra.gmra.mrb[0].mxu1 %v1093_v57 }
  0x8f   : > { %967 = vmatpush3.bf16.msra.mxu1 %v340_v53  ;;  %491 = vmatprep.mubr.bf16.mxu0 %v1096_v58 }
  0x90   : > { %968 = vmatprep.subr.bf16.mxu1 %v341_v59  ;;  %970 = vmatprep.mubr.msk.bf16.mxu1 %vm432_vm1, %v1098_v60 }
  0x93   : > { %969 = vmatpush3.bf16.msra.mxu1 %v341_v59 }
  0x96   : > { %492 = vmatmul.mubr.bf16.gmra.mrb[4].mxu0 %v1099_v61  ;;  %971 = vmatmul.mubr.msk.bf16.vlgmr.msra.gmra.mrb[4].mxu1 %vm432_vm1, %v1100_v62 }
  0x97   : > { %499 = vmatprep.mubr.bf16.mxu0 %v1101_v63  ;;  %974 = vmatprep.mubr.msk.bf16.mxu1 %vm432_vm1, %v1103_v0 }
  0x9e   : > { %500 = vmatmul.mubr.bf16.gmra.mrb[8].mxu0 %v1104_v1  ;;  %975 = vmatmul.mubr.msk.bf16.gmra.mrb[8].mxu1 %vm432_vm1, %v1105_v2 }
  0x9f   : > { %507 = vmatprep.mubr.bf16.mxu0 %v1106_v3  ;;  %978 = vmatprep.mubr.msk.bf16.mxu1 %vm432_vm1, %v1108_v4 }
  0xa6   : > { %508 = vmatmul.mubr.bf16.gmra.mrb[12].mxu0 %v1109_v5  ;;  %979 = vmatmul.mubr.msk.bf16.gmra.mrb[12].mxu1 %vm432_vm1, %v1110_v6 }
  0xa7   : > { %515 = vmatprep.mubr.bf16.mxu0 %v1111_v7 }
  0xae   : > { %516 = vmatmul.mubr.bf16.gmra.mrb[16].mxu0 %v1113_v8 }
 0x161   : > { %v922_v9 = vpop.f32.mrb[0].mxu0  ;;  %v952_v10 = vpop.f32.mrb[0].mxu1 }
 0x162   : > { %v923_v11 = vpop.f32.mrb[1].mxu0  ;;  %v953_v12 = vpop.f32.mrb[1].mxu1 }
 0x163   : > { %v924_v13 = vadd.f32 %v923_v11, %v922_v9  ;;  %v954_v14 = vadd.f32 %v953_v12, %v952_v10  ;;  %v925_v15 = vpop.f32.mrb[2].mxu0  ;;  %v955_v16 = vpop.f32.mrb[2].mxu1 }
 0x164   : > { %v926_v17 = vpop.f32.mrb[3].mxu0  ;;  %v956_v18 = vpop.f32.mrb[3].mxu1 }
 0x165   : > { %v927_v19 = vadd.f32 %v926_v17, %v925_v15  ;;  %v957_v20 = vadd.f32 %v956_v18, %v955_v16  ;;  %v613_v17 = vld [vmem:[%s1433_s20] sm:$0xff] }
 0x169   : > { %v928_v21 = vpop.f32.mrb[4].mxu0  ;;  %v972_v22 = vpop.f32.mrb[4].mxu1 }
 0x16a   : > { %v929_v23 = vpop.f32.mrb[5].mxu0  ;;  %v566_v24 = vpop.f32.mrb[5].mxu1 }
 0x16b   : > { %v930_v25 = vadd.f32 %v929_v23, %v928_v21  ;;  %v567_v26 = vadd.f32 %v924_v13, %v566_v24  ;;  %v931_v27 = vpop.f32.mrb[6].mxu0  ;;  %v973_v28 = vpop.f32.mrb[6].mxu1 }
 0x16c   : > { %v932_v29 = vpop.f32.mrb[7].mxu0  ;;  %v569_v30 = vpop.f32.mrb[7].mxu1 }
 0x16d   : > { %v933_v31 = vadd.f32 %v932_v29, %v931_v27  ;;  %v570_v32 = vadd.f32 %v927_v19, %v569_v30  ;;  %625 = vadd.xlane.f32.xlu0 %v567_v26  ;;  %v575_v33 = vadd.f32 %v972_v22, %v930_v25  ;;  %v686_v40 = vmul.f32 %v567_v26, %v567_v26  ;;  %v615_v19 = vld [vmem:[%s1433_s20 + $0x10] sm:$0xff]  ;;  %v614_v22 = vld [vmem:[%s1433_s20 + $0x8] sm:$0xff]  ;;  %v616_v25 = vld [vmem:[%s1433_s20 + $0x18] sm:$0xff] }
 0x16f   : > { %629 = vadd.xlane.f32.xlu1 %v575_v33  ;;  %v578_v34 = vadd.f32 %v973_v28, %v933_v31  ;;  %v687_v47 = vmul.f32 %v570_v32, %v570_v32  ;;  %v688_v49 = vmul.f32 %v575_v33, %v575_v33  ;;  %v674_v28 = vld [vmem:[%s1438_s23] sm:$0xff]  ;;  %v675_v31 = vld [vmem:[%s1438_s23 + $0x8] sm:$0xff] }
 0x171   : > { %627 = vadd.xlane.f32.xlu0 %v570_v32  ;;  %v934_v35 = vpop.f32.mrb[8].mxu0  ;;  %v976_v36 = vpop.f32.mrb[8].mxu1  ;;  %v689_v52 = vmul.f32 %v578_v34, %v578_v34 }
 0x172   : > { %v935_v37 = vpop.f32.mrb[9].mxu0  ;;  %v582_v38 = vpop.f32.mrb[9].mxu1 }
 0x173   : > { %631 = vadd.xlane.f32.xlu1 %v578_v34  ;;  %v936_v39 = vadd.f32 %v935_v37, %v934_v35  ;;  %v937_v41 = vpop.f32.mrb[10].mxu0  ;;  %v977_v42 = vpop.f32.mrb[10].mxu1  ;;  %v676_v34 = vld [vmem:[%s1438_s23 + $0x10] sm:$0xff]  ;;  %v677_v37 = vld [vmem:[%s1438_s23 + $0x18] sm:$0xff] }
 0x174   : > { %v938_v43 = vpop.f32.mrb[11].mxu0  ;;  %v585_v44 = vpop.f32.mrb[11].mxu1 }
 0x175   : > { %698 = vadd.xlane.f32.xlu0 %v686_v40  ;;  %v583_v45 = vadd.f32 %v936_v39, %v582_v38  ;;  %v939_v46 = vadd.f32 %v938_v43, %v937_v41  ;;  %v617_v40 = vld [vmem:[%s1433_s20 + $0x20] sm:$0xff]  ;;  %v618_v43 = vld [vmem:[%s1433_s20 + $0x28] sm:$0xff] }
 0x177   : > { %700 = vadd.xlane.f32.xlu1 %v687_v47  ;;  %v586_v48 = vadd.f32 %v939_v46, %v585_v44  ;;  %v690_v0 = vmul.f32 %v583_v45, %v583_v45  ;;  %v678_v46 = vld [vmem:[%s1438_s23 + $0x20] sm:$0xff] }
 0x179   : > { %v940_v50 = vpop.f32.mrb[12].mxu0  ;;  %v980_v51 = vpop.f32.mrb[12].mxu1  ;;  %702 = vadd.xlane.f32.xlu0 %v688_v49  ;;  %v691_v3 = vmul.f32 %v586_v48, %v586_v48  ;;  %v679_v49 = vld [vmem:[%s1438_s23 + $0x28] sm:$0xff] }
 0x17a   : > { %v607_v53 = vadd.f32 %v980_v51, %v954_v14  ;;  %v941_v54 = vpop.f32.mrb[13].mxu0  ;;  %v598_v55 = vpop.f32.mrb[13].mxu1 }
 0x17b   : > { %v942_v56 = vadd.f32 %v941_v54, %v940_v50  ;;  %v943_v57 = vpop.f32.mrb[14].mxu0  ;;  %v981_v58 = vpop.f32.mrb[14].mxu1  ;;  %704 = vadd.xlane.f32.xlu1 %v689_v52  ;;  %v623_v52 = vld [vmem:[%s1433_s20 + $0x50] sm:$0xff] }
 0x17c   : > { %v610_v59 = vadd.f32 %v981_v58, %v957_v20  ;;  %v944_v60 = vpop.f32.mrb[15].mxu0  ;;  %v601_v61 = vpop.f32.mrb[15].mxu1  ;;  %v696_v15 = vmul.f32 %v607_v53, %v607_v53  ;;  %v619_v58 = vld [vmem:[%s1433_s20 + $0x30] sm:$0xff] }
 0x17d   : > { %v945_v62 = vadd.f32 %v944_v60, %v943_v57  ;;  %633 = vadd.xlane.f32.xlu0 %v583_v45  ;;  %v591_v63 = vadd.f32 %v976_v36, %v942_v56 }
 0x17e   : > { %v697_v16 = vmul.f32 %v610_v59, %v610_v59 }
 0x17f   : > { %635 = vadd.xlane.f32.xlu1 %v586_v48  ;;  %v594_v1 = vadd.f32 %v977_v42, %v945_v62  ;;  %v692_v11 = vmul.f32 %v591_v63, %v591_v63 }
 0x181   : > { %v946_v2 = vpop.f32.mrb[16].mxu0  ;;  %706 = vadd.xlane.f32.xlu0 %v690_v0  ;;  %v693_v12 = vmul.f32 %v594_v1, %v594_v1  ;;  %v680_v0 = vld [vmem:[%s1438_s23 + $0x30] sm:$0xff] }
 0x182   : > { %v947_v4 = vpop.f32.mrb[17].mxu0 }
 0x183   : > { %v948_v5 = vadd.f32 %v947_v4, %v946_v2  ;;  %v949_v6 = vpop.f32.mrb[18].mxu0  ;;  %708 = vadd.xlane.f32.xlu1 %v691_v3  ;;  %v681_v3 = vld [vmem:[%s1438_s23 + $0x38] sm:$0xff] }
 0x184   : > { %v950_v7 = vpop.f32.mrb[19].mxu0 }
 0x185   : > { %v951_v8 = vadd.f32 %v950_v7, %v949_v6  ;;  %645 = vadd.xlane.f32.xlu0 %v607_v53  ;;  %v599_v9 = vadd.f32 %v948_v5, %v598_v55  ;;  %v624_v55 = vld [vmem:[%s1433_s20 + $0x58] sm:$0xff]  ;;  %v621_v6 = vld [vmem:[%s1433_s20 + $0x40] sm:$0xff] }
 0x187   : > { %647 = vadd.xlane.f32.xlu1 %v610_v59  ;;  %v602_v10 = vadd.f32 %v951_v8, %v601_v61  ;;  %v694_v13 = vmul.f32 %v599_v9, %v599_v9  ;;  %v620_v61 = vld [vmem:[%s1433_s20 + $0x38] sm:$0xff] }
 0x189   : > { %637 = vadd.xlane.f32.xlu0 %v591_v63  ;;  %v695_v14 = vmul.f32 %v602_v10, %v602_v10 }
 0x18b   : > { %639 = vadd.xlane.f32.xlu1 %v594_v1 }
 0x18d   : > { %710 = vadd.xlane.f32.xlu0 %v692_v11 }
 0x18f   : > { %712 = vadd.xlane.f32.xlu1 %v693_v12  ;;  %v682_v12 = vld [vmem:[%s1438_s23 + $0x40] sm:$0xff] }
 0x191   : > { %641 = vadd.xlane.f32.xlu0 %v599_v9  ;;  %v622_v9 = vld [vmem:[%s1433_s20 + $0x48] sm:$0xff] }
 0x193   : > { %643 = vadd.xlane.f32.xlu1 %v602_v10 }
 0x195   : > { %714 = vadd.xlane.f32.xlu0 %v694_v13 }
 0x197   : > { %716 = vadd.xlane.f32.xlu1 %v695_v14 }
 0x199   : > { %718 = vadd.xlane.f32.xlu0 %v696_v15  ;;  %v683_v15 = vld [vmem:[%s1438_s23 + $0x48] sm:$0xff] }
 0x19b   : > { %720 = vadd.xlane.f32.xlu1 %v697_v16 }
 0x1fa   : > { %v626_v18 = vpop.xlane.xlu0 %625 }
 0x1fb   : > { %v649_v20 = vadd.f32 %v626_v18, %v613_v17  ;;  %v684_v18 = vld [vmem:[%s1438_s23 + $0x50] sm:$0xff] }
 0x1fc   : > { %v630_v21 = vpop.xlane.xlu1 %629 }
 0x1fd   : > { %662 = vst.msk [vmem:[%s1433_s20] sm:$0xff] %vm661_vm2, %v649_v20  ;;  %v651_v23 = vadd.f32 %v630_v21, %v615_v19  ;;  %v685_v21 = vld [vmem:[%s1438_s23 + $0x58] sm:$0xff] }
 0x1fe   : > { %v628_v24 = vpop.xlane.xlu0 %627 }
 0x1ff   : > { %664 = vst.msk [vmem:[%s1433_s20 + $0x10] sm:$0xff] %vm661_vm2, %v651_v23  ;;  %v650_v26 = vadd.f32 %v628_v24, %v614_v22 }
 0x200   : > { %v632_v27 = vpop.xlane.xlu1 %631 }
 0x201   : > { %663 = vst.msk [vmem:[%s1433_s20 + $0x8] sm:$0xff] %vm661_vm2, %v650_v26  ;;  %v652_v29 = vadd.f32 %v632_v27, %v616_v25 }
 0x202   : > { %v699_v30 = vpop.xlane.xlu0 %698 }
 0x203   : > { %665 = vst.msk [vmem:[%s1433_s20 + $0x18] sm:$0xff] %vm661_vm2, %v652_v29  ;;  %v722_v32 = vadd.f32 %v699_v30, %v674_v28 }
 0x204   : > { %v701_v33 = vpop.xlane.xlu1 %700 }
 0x205   : > { %734 = vst.msk [vmem:[%s1438_s23] sm:$0xff] %vm661_vm2, %v722_v32  ;;  %v723_v35 = vadd.f32 %v701_v33, %v675_v31 }
 0x206   : > { %v703_v36 = vpop.xlane.xlu0 %702 }
 0x207   : > { %735 = vst.msk [vmem:[%s1438_s23 + $0x8] sm:$0xff] %vm661_vm2, %v723_v35  ;;  %v724_v38 = vadd.f32 %v703_v36, %v676_v34 }
 0x208   : > { %v705_v39 = vpop.xlane.xlu1 %704 }
 0x209   : > { %736 = vst.msk [vmem:[%s1438_s23 + $0x10] sm:$0xff] %vm661_vm2, %v724_v38  ;;  %v725_v41 = vadd.f32 %v705_v39, %v677_v37 }
 0x20a   : > { %v634_v42 = vpop.xlane.xlu0 %633 }
 0x20b   : > { %737 = vst.msk [vmem:[%s1438_s23 + $0x18] sm:$0xff] %vm661_vm2, %v725_v41  ;;  %v653_v44 = vadd.f32 %v634_v42, %v617_v40 }
 0x20c   : > { %v636_v45 = vpop.xlane.xlu1 %635 }
 0x20d   : > { %666 = vst.msk [vmem:[%s1433_s20 + $0x20] sm:$0xff] %vm661_vm2, %v653_v44  ;;  %v654_v47 = vadd.f32 %v636_v45, %v618_v43 }
 0x20e   : > { %v707_v48 = vpop.xlane.xlu0 %706 }
 0x20f   : > { %667 = vst.msk [vmem:[%s1433_s20 + $0x28] sm:$0xff] %vm661_vm2, %v654_v47  ;;  %v726_v50 = vadd.f32 %v707_v48, %v678_v46 }
 0x210   : > { %v709_v51 = vpop.xlane.xlu1 %708 }
 0x211   : > { %738 = vst.msk [vmem:[%s1438_s23 + $0x20] sm:$0xff] %vm661_vm2, %v726_v50  ;;  %v727_v53 = vadd.f32 %v709_v51, %v679_v49 }
 0x212   : > { %v646_v54 = vpop.xlane.xlu0 %645 }
 0x213   : > { %739 = vst.msk [vmem:[%s1438_s23 + $0x28] sm:$0xff] %vm661_vm2, %v727_v53  ;;  %v659_v56 = vadd.f32 %v646_v54, %v623_v52 }
 0x214   : > { %v648_v57 = vpop.xlane.xlu1 %647 }
 0x215   : > { %672 = vst.msk [vmem:[%s1433_s20 + $0x50] sm:$0xff] %vm661_vm2, %v659_v56  ;;  %v660_v59 = vadd.f32 %v648_v57, %v624_v55 }
 0x216   : > { %v638_v60 = vpop.xlane.xlu0 %637 }
 0x217   : > { %673 = vst.msk [vmem:[%s1433_s20 + $0x58] sm:$0xff] %vm661_vm2, %v660_v59  ;;  %v655_v62 = vadd.f32 %v638_v60, %v619_v58 }
 0x218   : > { %v640_v63 = vpop.xlane.xlu1 %639 }
 0x219   : > { %668 = vst.msk [vmem:[%s1433_s20 + $0x30] sm:$0xff] %vm661_vm2, %v655_v62  ;;  %v656_v1 = vadd.f32 %v640_v63, %v620_v61 }
 0x21a   : > { %v711_v2 = vpop.xlane.xlu0 %710 }
 0x21b   : > { %669 = vst.msk [vmem:[%s1433_s20 + $0x38] sm:$0xff] %vm661_vm2, %v656_v1  ;;  %v728_v4 = vadd.f32 %v711_v2, %v680_v0 }
 0x21c   : > { %v713_v5 = vpop.xlane.xlu1 %712 }
 0x21d   : > { %740 = vst.msk [vmem:[%s1438_s23 + $0x30] sm:$0xff] %vm661_vm2, %v728_v4  ;;  %v729_v7 = vadd.f32 %v713_v5, %v681_v3 }
 0x21e   : > { %v642_v8 = vpop.xlane.xlu0 %641 }
 0x21f   : > { %741 = vst.msk [vmem:[%s1438_s23 + $0x38] sm:$0xff] %vm661_vm2, %v729_v7  ;;  %v657_v10 = vadd.f32 %v642_v8, %v621_v6 }
 0x220   : > { %v644_v11 = vpop.xlane.xlu1 %643 }
 0x221   : > { %670 = vst.msk [vmem:[%s1433_s20 + $0x40] sm:$0xff] %vm661_vm2, %v657_v10  ;;  %v658_v13 = vadd.f32 %v644_v11, %v622_v9 }
 0x222   : > { %v715_v14 = vpop.xlane.xlu0 %714 }
 0x223   : > { %671 = vst.msk [vmem:[%s1433_s20 + $0x48] sm:$0xff] %vm661_vm2, %v658_v13  ;;  %v730_v16 = vadd.f32 %v715_v14, %v682_v12 }
 0x224   : > { %v717_v17 = vpop.xlane.xlu1 %716 }
 0x225   : > { %742 = vst.msk [vmem:[%s1438_s23 + $0x40] sm:$0xff] %vm661_vm2, %v730_v16  ;;  %v731_v19 = vadd.f32 %v717_v17, %v683_v15 }
 0x226   : > { %v719_v20 = vpop.xlane.xlu0 %718 }
 0x227   : > { %743 = vst.msk [vmem:[%s1438_s23 + $0x48] sm:$0xff] %vm661_vm2, %v731_v19  ;;  %v732_v22 = vadd.f32 %v719_v20, %v684_v18 }
 0x228   : > { %v721_v23 = vpop.xlane.xlu1 %720 }
 0x229   : > { %744 = vst.msk [vmem:[%s1438_s23 + $0x50] sm:$0xff] %vm661_vm2, %v732_v22  ;;  %v733_v24 = vadd.f32 %v721_v23, %v685_v21 }
 0x22b   : > { %745 = vst.msk [vmem:[%s1438_s23 + $0x58] sm:$0xff] %vm661_vm2, %v733_v24 }
 0x22c PF: > { %s18_s19 = sadd.s32 1, %s1242_s19   ;;  %s1645_s12 = smov %s1218_s13 }
 0x22d   : > { %p15_p9 = scmp.ge.s32.totalorder %s18_s19, 6   ;;  %s1646_s13 = smov %s1222_s14 }
 0x22e   : > { %s1647_s14 = smov %s1385_s4  ;;  %s1648_s15 = smov %s1234_s17 }
 0x22f   : > { %s1649_s16 = smov %s1238_s18  ;;  %s1650_s17 = smov %s1653_s25 }
 0x230   : > { %s1651_s18 = smov %s1657_s29  ;;  %17 = sbr.rel (!%p15_p9) target bundleno = 6 (0x6), region = 88 }
 0x237   :  { %783 = vsyncpa [#allocation3], 1 }
 0x238   :  { %785 = vsyncpa [#allocation3 + $0x1], 1 }
 0x239   :  { %786 = vsyncpa [#allocation5], 1 }

</bundles_post_ra>
